<compile_context>
chip_gen: v6e
topology: v6e:2x2x1
jax: 0.10.0
libtpu: 0.0.40
codegen_flags: <defaults>
</compile_context>

<pallas_src>
import functools
import math

import jax
import jax.numpy as jnp
from jax.experimental import pallas as pl
from jax.experimental.pallas import tpu as pltpu


_MASK = -1e30   # finite "-inf": safe under max/exp even for padded rows


def _pick_tile(dim, candidates):
    """Largest candidate tile that divides `dim`, else the full dim (always legal)."""
    for c in candidates:
        if dim % c == 0:
            return c
    return dim


def _device_kind():
    try:
        return jax.devices()[0].device_kind.lower()
    except Exception:
        return ""


def _vmem_limit_bytes(kind):
    # v5e/v6e (and v4/v5p) have 128 MiB VMEM per core -> allow big double-buffered tiles.
    # v7x has 64 MiB per TensorCore -> stay conservative.  Unknown chips: conservative.
    if "v7" in kind:
        return 48 * 1024 * 1024
    if any(t in kind for t in ("v4", "v5", "v6")):
        return 100 * 1024 * 1024
    return 48 * 1024 * 1024


def _softmax_exp_dtype(kind):
    # bf16 EUP exists on v6e/v7x; keep f32 exp on v5e and older (no bf16 EUP there).
    if "v6" in kind or "v7" in kind:
        return jnp.bfloat16
    return jnp.float32


# --------------------------------------------------------------------------------------
# Kernel 1: fused QKV projection  (B*T, C) @ (C, 3C) + bias
#           (q columns already carry 1/sqrt(hd) via the pre-scaled weight/bias)
# --------------------------------------------------------------------------------------
def _qkv_proj_kernel(x_ref, w_ref, b_ref, qkv_ref):
    # x_ref: (tm, C) bf16   w_ref: (C, tn) bf16   b_ref: (1, tn) f32   qkv_ref: (tm, tn) bf16
    acc = jnp.dot(x_ref[...], w_ref[...], preferred_element_type=jnp.float32)   # MXU
    qkv_ref[...] = (acc + b_ref[...]).astype(qkv_ref.dtype)


# --------------------------------------------------------------------------------------
# Kernel 2: flash attention (head-batched, online softmax) + fused output projection
# --------------------------------------------------------------------------------------
def _flash_attn_proj_kernel(q_ref, k_ref, v_ref, wp_ref, bp_ref, o_ref,
                            m_scr, l_scr, acc_scr, *, exp_dtype):
    # q_ref : (1, H, tq, hd) bf16 (pre-scaled by 1/sqrt(hd))
    # k_ref : (1, H, hd, tk) bf16 (K pre-transposed -> MXU-native, lane-dense)
    # v_ref : (1, H, tk, hd) bf16
    # wp_ref: (H, hd, C)     bf16 (head-indexed W_proj^T)
    # bp_ref: (1, C)         f32
    # o_ref : (1, tq, C)
    n_head, tq, hd = q_ref.shape[1], q_ref.shape[2], q_ref.shape[3]
    tk = k_ref.shape[3]
    qi = pl.program_id(1)
    ki = pl.program_id(2)

    @pl.when(ki == 0)
    def _init():
        m_scr[...] = jnp.full(m_scr.shape, _MASK, jnp.float32)
        l_scr[...] = jnp.zeros(l_scr.shape, jnp.float32)
        acc_scr[...] = jnp.zeros(acc_scr.shape, jnp.float32)

    q_start = qi * tq
    k_start = ki * tk

    # Tile contributes at least one (row, col) with col <= row:
    live = k_start <= q_start + (tq - 1)
    # Tile straddles the causal diagonal (otherwise it is fully unmasked):
    needs_mask = k_start + (tk - 1) > q_start

    def _scores():
        # Head-batched scores on the MXU: (H, tq, tk) f32, no per-step K transpose.
        return jnp.einsum('hqd,hdk->hqk', q_ref[0], k_ref[0],
                          preferred_element_type=jnp.float32)

    def _online_update(s):
        # Online (flash) softmax.  Running stats / rescale stay in f32; the big exp may
        # run in bf16 on chips with a bf16 EUP (exp_dtype).
        m_prev = m_scr[...]
        m_new = jnp.maximum(m_prev, jnp.max(s, axis=-1, keepdims=True))
        alpha = jnp.exp(m_prev - m_new)                       # f32, (H, tq, 1)
        p = jnp.exp((s - m_new).astype(exp_dtype))            # (H, tq, tk)
        l_scr[...] = alpha * l_scr[...] + jnp.sum(
            p.astype(jnp.float32), axis=-1, keepdims=True)
        acc_scr[...] = alpha * acc_scr[...] + jnp.einsum(
            'hqk,hkd->hqd', p.astype(v_ref.dtype), v_ref[0],
            preferred_element_type=jnp.float32)
        m_scr[...] = m_new

    @pl.when(jnp.logical_and(live, jnp.logical_not(needs_mask)))
    def _update_unmasked():
        _online_update(_scores())

    @pl.when(jnp.logical_and(live, needs_mask))
    def _update_masked():
        s = _scores()
        row = q_start + jax.lax.broadcasted_iota(jnp.int32, (tq, tk), 0)
        col = k_start + jax.lax.broadcasted_iota(jnp.int32, (tq, tk), 1)
        s = s + jnp.where(col <= row, 0.0, _MASK)[None, :, :]
        _online_update(s)

    @pl.when(ki == pl.num_programs(2) - 1)
    def _finalize():
        # Normalize with the EUP reciprocal (free slot), then the head-indexed output
        # projection: an unrolled per-head MXU dot accumulation (no lane-offset
        # concatenate / XLU relayout of the (H, tq, hd) accumulator).
        y = acc_scr[...] * pl.reciprocal(l_scr[...], approx=True)     # (H, tq, hd) f32
        yb = y.astype(wp_ref.dtype)
        out = jnp.dot(yb[0], wp_ref[0], preferred_element_type=jnp.float32)
        for h in range(1, n_head):
            out = out + jnp.dot(yb[h], wp_ref[h], preferred_element_type=jnp.float32)
        o_ref[0] = (out + bp_ref[...]).astype(o_ref.dtype)


# --------------------------------------------------------------------------------------
# Wrapper
# --------------------------------------------------------------------------------------
def causal_self_attention(x, w_attn, b_attn, w_proj, b_proj, n_head):
    """x: (B, T, C).  w_attn: (3C, C), b_attn: (3C,), w_proj: (C, C), b_proj: (C,) (torch layout)."""
    B, T, C = x.shape
    assert C % n_head == 0
    hd = C // n_head
    M = B * T

    kind = _device_kind()
    vmem_limit = _vmem_limit_bytes(kind)
    exp_dtype = _softmax_exp_dtype(kind)
    big_vmem = vmem_limit > (64 << 20)

    # ---- layout / dtype glue (wrapper-side, handled by XLA; weights bf16 for the MXU) ----
    q_scale = 1.0 / math.sqrt(hd)
    # Fold the attention scale into the q columns of W_attn^T / b_attn (one O(C*3C) op).
    col_scale = jnp.concatenate(
        [jnp.full((C,), q_scale, jnp.float32), jnp.ones((2 * C,), jnp.float32)])
    w_attn_t = (jnp.transpose(w_attn).astype(jnp.float32)
                * col_scale[None, :]).astype(jnp.bfloat16)            # (C, 3C) bf16
    b_attn_2d = (b_attn.astype(jnp.float32) * col_scale).reshape(1, 3 * C)
    wp3 = jnp.transpose(w_proj).reshape(n_head, hd, C).astype(jnp.bfloat16)  # (H, hd, C)
    b_proj_2d = b_proj.reshape(1, C).astype(jnp.float32)
    x2d = x.reshape(M, C).astype(jnp.bfloat16)                        # lane-dense bf16 rows

    # ---------- kernel 1: QKV projection ----------
    tm = _pick_tile(M, (1024, 512, 256, 128) if big_vmem else (512, 256, 128))
    weight_resident_bytes = (2 * (C * 3 * C * 2)        # W_attn^T (bf16, double-buffered)
                             + 2 * (tm * C * 2)         # x tile
                             + 2 * (tm * 3 * C * 2)     # output tile
                             + 3 * C * 4)               # bias
    if weight_resident_bytes <= int(vmem_limit * 0.8):
        # Whole (C, 3C) weight stays resident in VMEM: no re-streaming per row tile.
        qkv = pl.pallas_call(
            _qkv_proj_kernel,
            out_shape=jax.ShapeDtypeStruct((M, 3 * C), jnp.bfloat16),
            grid=(M // tm,),
            in_specs=[
                pl.BlockSpec((tm, C), lambda i: (i, 0)),
                pl.BlockSpec((C, 3 * C), lambda i: (0, 0)),
                pl.BlockSpec((1, 3 * C), lambda i: (0, 0)),
            ],
            out_specs=pl.BlockSpec((tm, 3 * C), lambda i: (i, 0)),
            compiler_params=pltpu.CompilerParams(
                dimension_semantics=("parallel",),
                vmem_limit_bytes=vmem_limit),
        )(x2d, w_attn_t, b_attn_2d)
    else:
        # Fallback for very large C: tile the weight columns as well.
        tn = _pick_tile(3 * C, (1024, 512, 256, 128))
        qkv = pl.pallas_call(
            _qkv_proj_kernel,
            out_shape=jax.ShapeDtypeStruct((M, 3 * C), jnp.bfloat16),
            grid=(M // tm, (3 * C) // tn),
            in_specs=[
                pl.BlockSpec((tm, C), lambda i, j: (i, 0)),
                pl.BlockSpec((C, tn), lambda i, j: (0, j)),
                pl.BlockSpec((1, tn), lambda i, j: (0, j)),
            ],
            out_specs=pl.BlockSpec((tm, tn), lambda i, j: (i, j)),
            compiler_params=pltpu.CompilerParams(
                dimension_semantics=("parallel", "parallel"),
                vmem_limit_bytes=vmem_limit),
        )(x2d, w_attn_t, b_attn_2d)

    # Head-major relayout (XLA-side layout plumbing).  K is transposed to (B, H, hd, T)
    # here so the attention kernel never transposes K on the XLU.
    # TODO(synk): emit q/k/v as three head-major outputs from kernel 1 if this relayout
    # shows up in profiles.
    qkv = qkv.reshape(B, T, 3, n_head, hd)
    q = jnp.transpose(qkv[:, :, 0], (0, 2, 1, 3))              # (B, H, T, hd) bf16
    k = jnp.transpose(qkv[:, :, 1], (0, 2, 3, 1))              # (B, H, hd, T) bf16
    v = jnp.transpose(qkv[:, :, 2], (0, 2, 1, 3))              # (B, H, T, hd) bf16

    # ---------- kernel 2: flash attention + output projection ----------
    tq = _pick_tile(T, (256, 128))
    tk = tq
    nq, nk = T // tq, T // tk

    # Above-diagonal kv tiles: clamp the block index to the last kv block this q tile
    # needs, so Pallas elides the DMA (compute is skipped in-kernel via pl.when).
    def _kv_block(i, j):
        return jnp.minimum(j, ((i + 1) * tq - 1) // tk)

    # TODO(synk): for very large C (>= ~2048) on v7x, un-fuse the output projection (or
    # pin wp3 with pipeline_mode=pl.Buffered(1)) to respect the 64 MiB per-TC VMEM.
    out = pl.pallas_call(
        functools.partial(_flash_attn_proj_kernel, exp_dtype=exp_dtype),
        out_shape=jax.ShapeDtypeStruct((B, T, C), x.dtype),
        grid=(B, nq, nk),
        in_specs=[
            pl.BlockSpec((1, n_head, tq, hd), lambda b, i, j: (b, 0, i, 0)),          # q
            pl.BlockSpec((1, n_head, hd, tk), lambda b, i, j: (b, 0, 0, _kv_block(i, j))),  # k^T
            pl.BlockSpec((1, n_head, tk, hd), lambda b, i, j: (b, 0, _kv_block(i, j), 0)),  # v
            pl.BlockSpec((n_head, hd, C), lambda b, i, j: (0, 0, 0)),                 # W_proj^T
            pl.BlockSpec((1, C), lambda b, i, j: (0, 0)),                             # b_proj
        ],
        out_specs=pl.BlockSpec((1, tq, C), lambda b, i, j: (b, i, 0)),
        scratch_shapes=[
            pltpu.VMEM((n_head, tq, 1), jnp.float32),   # running max
            pltpu.VMEM((n_head, tq, 1), jnp.float32),   # running denominator
            pltpu.VMEM((n_head, tq, hd), jnp.float32),  # output accumulator
        ],
        compiler_params=pltpu.CompilerParams(
            dimension_semantics=("parallel", "parallel", "arbitrary"),
            vmem_limit_bytes=vmem_limit),
    )(q, k, v, wp3, b_proj_2d)
    return out


# --------------------------------------------------------------------------------------
# Pure-JAX reference (f32) for verification
# --------------------------------------------------------------------------------------
def _reference(x, w_attn, b_attn, w_proj, b_proj, n_head):
    B, T, C = x.shape
    hd = C // n_head
    qkv = jnp.einsum('btc,oc->bto', x, w_attn) + b_attn
    q, k, v = jnp.split(qkv, 3, axis=2)
    def heads(t):
        return jnp.transpose(t.reshape(B, T, n_head, hd), (0, 2, 1, 3))
    q, k, v = heads(q), heads(k), heads(v)
    att = jnp.einsum('bhtd,bhsd->bhts', q, k) / math.sqrt(hd)
    mask = jnp.tril(jnp.ones((T, T), dtype=bool))
    att = jnp.where(mask, att, -jnp.inf)
    att = jax.nn.softmax(att, axis=-1)
    y = jnp.einsum('bhts,bhsd->bhtd', att, v)
    y = jnp.transpose(y, (0, 2, 1, 3)).reshape(B, T, C)
    return jnp.einsum('btc,oc->bto', y, w_proj) + b_proj


if __name__ == "__main__":
    B, T, C, n_head = 2, 8, 32, 4

    key = jax.random.PRNGKey(0)
    kx, kw1, kb1, kw2, kb2 = jax.random.split(key, 5)

    x = jax.random.normal(kx, (B, T, C), dtype=jnp.float32)
    # nn.Linear(C, 3C): weight (3C, C), bias (3C,);  nn.Linear(C, C): weight (C, C), bias (C,)
    w_attn = jax.random.normal(kw1, (3 * C, C), dtype=jnp.float32) * (1.0 / math.sqrt(C))
    b_attn = jax.random.normal(kb1, (3 * C,), dtype=jnp.float32) * 0.02
    w_proj = jax.random.normal(kw2, (C, C), dtype=jnp.float32) * (1.0 / math.sqrt(C))
    b_proj = jax.random.normal(kb2, (C,), dtype=jnp.float32) * 0.02

    out = causal_self_attention(x, w_attn, b_attn, w_proj, b_proj, n_head)
    out = jax.block_until_ready(out)

    ref = _reference(x, w_attn, b_attn, w_proj, b_proj, n_head)
    assert out.shape == (B, T, C)
    # bf16 MXU operands / bf16 exp (on v6e+) / approx reciprocal -> bf16-level tolerance.
    assert jnp.allclose(out, ref, atol=5e-2, rtol=5e-2), "mismatch vs pure-JAX reference"

    print("KERNEL_OK")
</pallas_src>

<mosaic_0001>
module attributes {stable_mosaic.version = 11 : i64} {
  func.func @_qkv_proj_kernel(%arg0: i32, %arg1: memref<16x32xbf16, #tpu.memory_space<vmem>>, %arg2: memref<32x96xbf16, #tpu.memory_space<vmem>>, %arg3: memref<1x96xf32, #tpu.memory_space<vmem>>, %arg4: memref<16x96xbf16, #tpu.memory_space<vmem>>) attributes {dimension_semantics = [#tpu.dimension_semantics<parallel>], iteration_bounds = array<i64: 1>, scalar_prefetch = 0 : i64, scratch_operands = 0 : i64, tpu.core_type = #tpu.core_type<tc>, window_params = [{transform_indices = @transform_0, window_bounds = array<i64: 16, 32>}, {pipeline_mode = #tpu.pipeline_mode<synchronous>, transform_indices = @transform_1, window_bounds = array<i64: 32, 96>}, {pipeline_mode = #tpu.pipeline_mode<synchronous>, transform_indices = @transform_2, window_bounds = array<i64: 1, 96>}, {transform_indices = @transform_3, window_bounds = array<i64: 16, 96>}]} {
    %c0 = arith.constant 0 : index
    %c0_0 = arith.constant 0 : index
    %0 = vector.load %arg1[%c0, %c0_0] : memref<16x32xbf16, #tpu.memory_space<vmem>>, vector<16x32xbf16>
    %c0_1 = arith.constant 0 : index
    %c0_2 = arith.constant 0 : index
    %1 = vector.load %arg2[%c0_1, %c0_2] : memref<32x96xbf16, #tpu.memory_space<vmem>>, vector<32x96xbf16>
    %cst = arith.constant dense<0.000000e+00> : vector<16x96xf32>
    %2 = tpu.matmul %0, %1, %cst {dimension_numbers = #tpu.dot_dimension_numbers<[1], [0], [0], [1], [0, 0, 1, 1], [], []>} : vector<16x32xbf16>, vector<32x96xbf16>, vector<16x96xf32> -> vector<16x96xf32>
    %c0_3 = arith.constant 0 : index
    %c0_4 = arith.constant 0 : index
    %3 = vector.load %arg3[%c0_3, %c0_4] : memref<1x96xf32, #tpu.memory_space<vmem>>, vector<1x96xf32>
    %4 = vector.broadcast %3 : vector<1x96xf32> to vector<16x96xf32>
    %5 = arith.addf %2, %4 : vector<16x96xf32>
    %6 = arith.truncf %5 : vector<16x96xf32> to vector<16x96xbf16>
    %c0_5 = arith.constant 0 : index
    %c0_6 = arith.constant 0 : index
    %7 = vector.load %arg4[%c0_5, %c0_6] : memref<16x96xbf16, #tpu.memory_space<vmem>>, vector<16x96xbf16>
    tpu.vector_store %arg4[%c0_5, %c0_6], %6 {strides = array<i32>} : memref<16x96xbf16, #tpu.memory_space<vmem>>, vector<16x96xbf16>,
    return
  }
  func.func @transform_0(%arg0: i32) -> (i32, i32) {
    %c0_i32 = arith.constant 0 : i32
    %c0_i32_0 = arith.constant 0 : i32
    return %arg0, %c0_i32 : i32, i32
  }
  func.func @transform_1(%arg0: i32) -> (i32, i32) {
    %c0_i32 = arith.constant 0 : i32
    %c0_i32_0 = arith.constant 0 : i32
    %c0_i32_1 = arith.constant 0 : i32
    return %c0_i32, %c0_i32_0 : i32, i32
  }
  func.func @transform_2(%arg0: i32) -> (i32, i32) {
    %c0_i32 = arith.constant 0 : i32
    %c0_i32_0 = arith.constant 0 : i32
    %c0_i32_1 = arith.constant 0 : i32
    return %c0_i32, %c0_i32_0 : i32, i32
  }
  func.func @transform_3(%arg0: i32) -> (i32, i32) {
    %c0_i32 = arith.constant 0 : i32
    %c0_i32_0 = arith.constant 0 : i32
    return %arg0, %c0_i32 : i32, i32
  }
}

</mosaic_0001>

<bundles_post_ra>
// kernel: tpu_custom_call.1
= control target key start
LH: loop header
LB: loop body
LE: loop exit
PB: predicated region body
PF: predicated region fallthrough
CT: control target
= control target key end

     0   :  { %8 = vsyncpa [#allocation3], 0  ;;  %s292_s0 = inlined_call_operand.hbm [shape: bf16[16,32], index: 0, kind: input, shape index: {}]   ;;  %s293_s1 = inlined_call_operand.hbm [shape: bf16[32,96], index: 1, kind: input, shape index: {}]   ;;  %s294_s2 = inlined_call_operand.vmem [shape: f32[1,96], index: 2, kind: input, shape index: {}]   ;;  %s295_s3 = inlined_call_operand.hbm [shape: bf16[16,96], index: 3, kind: output, shape index: {}]  }
   0x1   :  { %9 = vsyncpa [#allocation6], 0 }
   0x2   :  { %10 = vsyncpa [#allocation4], 0  ;;  %s244_s12 = smov [#allocation2]  }
   0x3   :  { %s16_s13 = sshll.u32 %s244_s12, 4  ;;  %s17_s13 = int_to_ptr.vmem [resolvable:$true] %s16_s13 }
   0x4   :  { %s186_s14 = scalar_lea.vmem %s17_s13, 128  ;;  %p191_p1 = scmp.lt.s32.totalorder %s17_s13, %s17_s13 }
   0x5   :  { %p187_p0 = scmp.ne.s32.totalorder %s17_s13, %s186_s14  ;;  %p192_p2 = scmp.lt.s32.totalorder %s186_s14, %s186_s14 }
   0x7   :  { %p193_p3 = por %p192_p2, %p191_p1 }
   0x9   :  { %p194_p4 = pnand %p193_p3, %p187_p0 }
   0xb   :  { %197 = shalt.err (!%p194_p4)
}
   0xc   :  { %s245_s15 = smov 64   ;;  %s246_s16 = smov 4  }
   0xd   :  { %22 = dma.hbm_to_vmem [thread:$0]  %s292_s0, 128, %s17_s13, [#allocation3], %s245_s15, %s245_s15, %s246_s16  }
   0xe   :  { %s247_s19 = smov [#allocation5]  }
   0xf   :  { %s28_s20 = sshll.u32 %s247_s19, 4  ;;  %s29_s20 = int_to_ptr.vmem [resolvable:$true] %s28_s20 }
  0x10   :  { %s206_s21 = scalar_lea.vmem %s29_s20, 256  ;;  %p211_p6 = scmp.lt.s32.totalorder %s29_s20, %s29_s20 }
  0x11   :  { %p207_p5 = scmp.ne.s32.totalorder %s29_s20, %s206_s21  ;;  %p212_p7 = scmp.lt.s32.totalorder %s206_s21, %s206_s21 }
  0x13   :  { %p213_p8 = por %p212_p7, %p211_p6 }
  0x15   :  { %p214_p9 = pnand %p213_p8, %p207_p5 }
  0x17   :  { %217 = shalt.err (!%p214_p9)
}
  0x18   :  { %34 = dma.hbm_to_vmem [thread:$0]  %s293_s1, 256, %s29_s20, [#allocation6], %s245_s15, %s245_s15, %s246_s16  }
  0x19   :  { %238 = dma.done.wait [#allocation3], 128  }
  0x1a   :  { %239 = vsyncadd [#allocation3], 4294967168 }
  0x1b   :  { %240 = dma.done.wait [#allocation6], 256  }
  0x1c   :  { %241 = vsyncadd [#allocation6], 4294967040  ;;  %v248_v0 = vmov 0.0   ;;  %vm249_vm0 = vmmov 0   ;;  %v175_v1 = vld [vmem:[#allocation5 + $0x8] sm:$0xff]   ;;  %v176_v2 = vld [vmem:[#allocation5] sm:$0xff]  }
  0x1d   :  { %160 = vmatprep.subr.bf16.mxu0 %v248_v0  ;;  %164 = vmatprep.mubr.msk.bf16.mxu0 %vm249_vm0, %v248_v0  ;;  %v177_v3 = vld [vmem:[#allocation2] sm:$0xff]   ;;  %vm74_vm1 = vcmask 261120   ;;  %vm127_vm2 = vcmask 781312   ;;  %s250_s1 = smov [#allocation7]  }
  0x1e   :  { %161 = vmatpush3.bf16.msra.mxu0 %v175_v1  ;;  %v148_v4 = vld [vmem:[%s294_s2] ss:$0 sm:$0xff]  ;;  %s135_s25 = sshll.u32 %s250_s1, 4  ;;  %s136_s25 = int_to_ptr.vmem [resolvable:$true] %s135_s25 }
  0x1f   :  { %162 = vmatprep.subr.bf16.mxu0 %v248_v0  ;;  %s218_s26 = scalar_lea.vmem %s136_s25, 128  ;;  %p223_p11 = scmp.lt.s32.totalorder %s136_s25, %s136_s25 }
  0x20   :  { %p219_p10 = scmp.ne.s32.totalorder %s136_s25, %s218_s26  ;;  %p224_p12 = scmp.lt.s32.totalorder %s218_s26, %s218_s26 }
  0x22   :  { %163 = vmatpush3.bf16.msra.mxu0 %v176_v2  ;;  %p225_p13 = por %p224_p12, %p223_p11 }
  0x24   :  { %p226_p0 = pnand %p225_p13, %p219_p10 }
  0x25   :  { %165 = vmatmul.mubr.msk.bf16.vlgmr.msra.gmra.mxu0 %vm74_vm1, %v177_v3 }
  0xe5   :  { %v112_v5 = vpop.f32.mrf.mxu0 }
  0xe6   :  { %v113_v6 = vadd.f32 %v148_v4, %v112_v5 }
  0xe7   :  { %v166_v7 = vpop.f32.mrf.mxu0 }
  0xe8   :  { %v155_v8 = vpack.c.bf16 %v113_v6, %v113_v6 }
  0xe9   :  { %v115_v9 = vpop.f32.mrf.mxu0 }
  0xea   :  { %v116_v10 = vadd.f32 %v148_v4, %v115_v9  ;;  %128 = vst.msk [vmem:[#allocation7] sm:$0xf] %vm127_vm2, %v155_v8 }
  0xeb   :  { %v167_v11 = vpop.f32.mrf.mxu0 }
  0xec   :  { %v156_v12 = vpack.c.bf16 %v116_v10, %v116_v10 }
  0xee   :  { %129 = vst.msk [vmem:[#allocation7 + $0x4] sm:$0xf] %vm127_vm2, %v156_v12 }
  0xef   :  { %229 = shalt.err (!%p226_p0)
}
  0xf0   :  { %141 = dma.vmem_to_hbm [thread:$0]  %s136_s25, 128, %s295_s3, [#allocation4], %s245_s15, %s245_s15, %s246_s16  }
  0xf1   :  { %242 = dma.done.wait [#allocation4], 128  }
  0xf2   :  { %243 = vsyncadd [#allocation4], 4294967168 }
  0xf3   :  { %145 = vsyncpa [#allocation3], 1 }
  0xf4   :  { %146 = vsyncpa [#allocation6], 1 }
  0xf5   :  { %147 = vsyncpa [#allocation4], 1 }

</bundles_post_ra>
